<compile_context>
chip_gen: v5e
topology: v5e:2x2
jax: 0.10.0
libtpu: 0.0.40
codegen_flags: <defaults>
</compile_context>

<pallas_src>
import functools

import jax
import jax.numpy as jnp
from jax.experimental import pallas as pl
from jax.experimental.pallas import tpu as pltpu

SUBLANES = 8
LANES = 128
# Live double-buffered input footprint budget (fits v5e/v6e/v7x scoped VMEM
# once vmem_limit_bytes is raised to 32 MiB).
_VMEM_LIVE_BUDGET = 20 << 20
_VMEM_LIMIT_BYTES = 32 << 20
# Below this many input bytes, XLA's fused elementwise+reduce is already at
# roofline and pallas_call launch overhead dominates.
_MIN_KERNEL_BYTES = 2 << 20


def _kl_kernel(mu_ref, lv_ref, out_ref, *, chunks, chunk_tile, need_mask):
    """Per-grid-block partial sum of (1 + log_var - mu^2 - exp(log_var))."""
    mu = mu_ref[...].astype(jnp.float32)        # (chunk_tile, sub, 128)
    lv = lv_ref[...].astype(jnp.float32)
    term = 1.0 + lv - mu * mu - jnp.exp(lv)     # VPU + EUP elementwise hot path

    if not need_mask:
        # Steady state: reduce over the leading (chunk) axis only -> pure
        # elementwise vreg adds; cross-lane reduce deferred to the wrapper.
        out_ref[...] = jnp.sum(term, axis=0)
    else:
        i = pl.program_id(0)
        last = pl.num_programs(0) - 1

        @pl.when(i < last)
        def _():
            out_ref[...] = jnp.sum(term, axis=0)

        @pl.when(i == last)
        def _():
            # Only the (single) partial last block pays for a mask; it is a
            # chunk-granularity mask built from one block-local iota compared
            # against a scalar remaining-chunk count (no global flat index,
            # no int32 overflow).  Garbage (inf/NaN) in out-of-range chunks
            # is removed by the select before the reduce.
            remaining = chunks - i * chunk_tile
            c = jax.lax.broadcasted_iota(jnp.int32, term.shape, 0)
            masked = jnp.where(c < remaining, term, jnp.float32(0.0))
            out_ref[...] = jnp.sum(masked, axis=0)


def kl_divergence_loss_ref(mu, log_var):
    mu = mu.astype(jnp.float32)
    log_var = log_var.astype(jnp.float32)
    return -0.5 * jnp.mean(1.0 + log_var - mu * mu - jnp.exp(log_var))


def kl_divergence_loss(mu, log_var, *, chunk_tile=1024, force_pallas=False):
    """Pallas implementation of -0.5 * mean(1 + log_var - mu^2 - exp(log_var))."""
    assert mu.shape == log_var.shape, "mu / log_var shape mismatch"
    total_n = mu.size

    mu_it = jnp.dtype(mu.dtype).itemsize
    lv_it = jnp.dtype(log_var.dtype).itemsize
    in_bytes_per_elem = mu_it + lv_it

    # Dtype-native sublane packing shared by both inputs (use the wider dtype
    # so both slabs describe the same elements): f32 -> 8, bf16 -> 16,
    # int8/fp8 -> 32 sublanes per chunk.
    packing = max(1, 4 // max(mu_it, lv_it))
    sub = SUBLANES * packing
    chunk = sub * LANES

    chunks = total_n // chunk

    # Tiny-input dispatch: XLA's fused elementwise+reduce is already optimal.
    if chunks < 1 or (not force_pallas
                      and total_n * in_bytes_per_elem < _MIN_KERNEL_BYTES):
        return kl_divergence_loss_ref(mu, log_var)

    aligned_n = chunks * chunk
    flat_mu = mu.reshape(-1)
    flat_lv = log_var.reshape(-1)

    # Ragged (<chunk)-element tail handled with plain jnp in the wrapper
    # instead of a full-array pad copy.
    if aligned_n != total_n:
        t_mu = flat_mu[aligned_n:].astype(jnp.float32)
        t_lv = flat_lv[aligned_n:].astype(jnp.float32)
        tail_sum = jnp.sum(1.0 + t_lv - t_mu * t_mu - jnp.exp(t_lv))
        flat_mu = flat_mu[:aligned_n]
        flat_lv = flat_lv[:aligned_n]
    else:
        tail_sum = jnp.float32(0.0)

    # Clamp tile so the double-buffered footprint stays inside a budget that
    # is safe on every generation (incl. v7x's 64 MiB VMEM), and keep the
    # grid >= 2 blocks so dimension_semantics=("parallel",) can shard across
    # the two v7x TensorCores.
    bytes_per_chunk = chunk * in_bytes_per_elem
    max_tile_by_vmem = max(1, _VMEM_LIVE_BUDGET // (2 * bytes_per_chunk))
    chunk_tile = max(1, min(chunk_tile, max_tile_by_vmem, chunks))
    if chunks >= 2:
        chunk_tile = min(chunk_tile, (chunks + 1) // 2)
    num_blocks = pl.cdiv(chunks, chunk_tile)
    # Mask only a partial last grid block; zero-free hot path everywhere else.
    need_mask = (chunks % chunk_tile) != 0

    mu3 = flat_mu.reshape(chunks, sub, LANES)
    lv3 = flat_lv.reshape(chunks, sub, LANES)

    kernel = functools.partial(
        _kl_kernel, chunks=chunks, chunk_tile=chunk_tile, need_mask=need_mask)

    partials = pl.pallas_call(
        kernel,
        out_shape=jax.ShapeDtypeStruct((num_blocks * sub, LANES), jnp.float32),
        grid_spec=pltpu.PrefetchScalarGridSpec(
            num_scalar_prefetch=0,
            grid=(num_blocks,),
            in_specs=[
                pl.BlockSpec((chunk_tile, sub, LANES), lambda i: (i, 0, 0)),
                pl.BlockSpec((chunk_tile, sub, LANES), lambda i: (i, 0, 0)),
            ],
            out_specs=pl.BlockSpec((sub, LANES), lambda i: (i, 0)),
        ),
        compiler_params=pltpu.CompilerParams(
            dimension_semantics=("parallel",),
            vmem_limit_bytes=_VMEM_LIMIT_BYTES),
        cost_estimate=pl.CostEstimate(
            flops=6 * aligned_n,
            transcendentals=aligned_n,
            bytes_accessed=aligned_n * in_bytes_per_elem
            + num_blocks * sub * LANES * 4),
    )(mu3, lv3)

    total = jnp.sum(partials) + tail_sum
    return jnp.float32(-0.5) * total / jnp.float32(total_n)


if __name__ == "__main__":
    key = jax.random.PRNGKey(0)
    k1, k2, k3, k4, k5, k6 = jax.random.split(key, 6)

    # 1) Small f32 case (batch=2, channels=4, spatial=16x16); force the Pallas
    #    path so the kernel is actually exercised (2 chunks -> 2 grid blocks).
    mu = jax.random.normal(k1, (2, 4, 16, 16), dtype=jnp.float32)
    log_var = 0.1 * jax.random.normal(k2, (2, 4, 16, 16), dtype=jnp.float32)
    out = jax.block_until_ready(kl_divergence_loss(mu, log_var, force_pallas=True))
    ref = kl_divergence_loss_ref(mu, log_var)
    assert jnp.allclose(out, ref, rtol=2e-5, atol=1e-6), (out, ref)

    # 2) Ragged f32 case: partial last grid block (mask path) + <1024-elem tail.
    mu_r = jax.random.normal(k3, (3, 1030), dtype=jnp.float32)
    lv_r = 0.1 * jax.random.normal(k4, (3, 1030), dtype=jnp.float32)
    out_r = jax.block_until_ready(
        kl_divergence_loss(mu_r, lv_r, chunk_tile=2, force_pallas=True))
    ref_r = kl_divergence_loss_ref(mu_r, lv_r)
    assert jnp.allclose(out_r, ref_r, rtol=2e-5, atol=1e-6), (out_r, ref_r)

    # 3) bf16 case: native 16-sublane packing.
    mu_b = jax.random.normal(k5, (2, 4, 16, 16), dtype=jnp.bfloat16)
    lv_b = (0.1 * jax.random.normal(k6, (2, 4, 16, 16))).astype(jnp.bfloat16)
    out_b = jax.block_until_ready(
        kl_divergence_loss(mu_b, lv_b, force_pallas=True))
    ref_b = kl_divergence_loss_ref(mu_b, lv_b)
    assert jnp.allclose(out_b, ref_b, rtol=1e-4, atol=1e-5), (out_b, ref_b)

    print("KERNEL_OK")
</pallas_src>

<mosaic_0001>
module attributes {stable_mosaic.version = 11 : i64} {
  func.func @_kl_kernel(%arg0: i32, %arg1: memref<1x8x128xf32, #tpu.memory_space<vmem>>, %arg2: memref<1x8x128xf32, #tpu.memory_space<vmem>>, %arg3: memref<8x128xf32, #tpu.memory_space<vmem>>) attributes {dimension_semantics = [#tpu.dimension_semantics<parallel>], iteration_bounds = array<i64: 2>, scalar_prefetch = 0 : i64, scratch_operands = 0 : i64, tpu.core_type = #tpu.core_type<tc>, window_params = [{transform_indices = @transform_0, window_bounds = array<i64: 1, 8, 128>}, {transform_indices = @transform_1, window_bounds = array<i64: 1, 8, 128>}, {transform_indices = @transform_2, window_bounds = array<i64: 8, 128>}]} {
    %c0 = arith.constant 0 : index
    %c0_0 = arith.constant 0 : index
    %c0_1 = arith.constant 0 : index
    %0 = vector.load %arg1[%c0, %c0_0, %c0_1] : memref<1x8x128xf32, #tpu.memory_space<vmem>>, vector<1x8x128xf32>
    %c0_2 = arith.constant 0 : index
    %c0_3 = arith.constant 0 : index
    %c0_4 = arith.constant 0 : index
    %1 = vector.load %arg2[%c0_2, %c0_3, %c0_4] : memref<1x8x128xf32, #tpu.memory_space<vmem>>, vector<1x8x128xf32>
    %cst = arith.constant 1.000000e+00 : f32
    %2 = vector.broadcast %cst : f32 to vector<1x8x128xf32>
    %3 = arith.addf %2, %1 : vector<1x8x128xf32>
    %4 = arith.mulf %0, %0 : vector<1x8x128xf32>
    %5 = arith.subf %3, %4 : vector<1x8x128xf32>
    %6 = math.exp %1 : vector<1x8x128xf32>
    %7 = arith.subf %5, %6 : vector<1x8x128xf32>
    %cst_5 = arith.constant dense<0.000000e+00> : vector<8x128xf32>
    %8 = vector.multi_reduction <add>, %7, %cst_5 [0] : vector<1x8x128xf32> to vector<8x128xf32>
    %c0_6 = arith.constant 0 : index
    %c0_7 = arith.constant 0 : index
    %9 = vector.load %arg3[%c0_6, %c0_7] : memref<8x128xf32, #tpu.memory_space<vmem>>, vector<8x128xf32>
    tpu.vector_store %arg3[%c0_6, %c0_7], %8 {strides = array<i32>} : memref<8x128xf32, #tpu.memory_space<vmem>>, vector<8x128xf32>,
    return
  }
  func.func @transform_0(%arg0: i32) -> (i32, i32, i32) {
    %c0_i32 = arith.constant 0 : i32
    %c0_i32_0 = arith.constant 0 : i32
    %c0_i32_1 = arith.constant 0 : i32
    return %arg0, %c0_i32, %c0_i32_0 : i32, i32, i32
  }
  func.func @transform_1(%arg0: i32) -> (i32, i32, i32) {
    %c0_i32 = arith.constant 0 : i32
    %c0_i32_0 = arith.constant 0 : i32
    %c0_i32_1 = arith.constant 0 : i32
    return %arg0, %c0_i32, %c0_i32_0 : i32, i32, i32
  }
  func.func @transform_2(%arg0: i32) -> (i32, i32) {
    %c0_i32 = arith.constant 0 : i32
    %c0_i32_0 = arith.constant 0 : i32
    return %arg0, %c0_i32 : i32, i32
  }
}

</mosaic_0001>

<bundles_post_ra>
// kernel: tpu_custom_call.1
= control target key start
LH: loop header
LB: loop body
LE: loop exit
PB: predicated region body
PF: predicated region fallthrough
CT: control target
= control target key end

     0   :  { %7 = vsyncpa [#allocation3], 0  ;;  %s694_s0 = inlined_call_operand.hbm [shape: f32[2,8,128], index: 0, kind: input, shape index: {}]   ;;  %s695_s1 = inlined_call_operand.hbm [shape: f32[2,8,128], index: 1, kind: input, shape index: {}]   ;;  %s696_s2 = inlined_call_operand.hbm [shape: f32[16,128], index: 2, kind: output, shape index: {}]  }
   0x1   :  { %9 = vsyncpa [#allocation3 + $0x1], 0 }
   0x2   :  { %10 = vsyncpa [#allocation6], 0 }
   0x3   :  { %12 = vsyncpa [#allocation6 + $0x1], 0 }
   0x4   :  { %13 = vsyncpa [#allocation4], 0 }
   0x5   :  { %15 = vsyncpa [#allocation4 + $0x1], 0  ;;  %s534_s9 = smov 0   ;;  %s536_s10 = smov 0  }
   0x6   :  { %s538_s11 = smov 0   ;;  %s540_s12 = smov 0  }
   0x7 LB: > { %s555_s13 = sadd.s32 4294967295, %s517_s12   ;;  %s319_s14 = sadd.s32 4294967294, %s517_s12   ;;  %s517_s12 = sphi %s540_s12, %s707_s12   ;;  %s513_s11 = sphi %s538_s11, %s706_s11   ;;  %s509_s10 = sphi %s536_s10, %s705_s10   ;;  %s505_s9 = sphi %s534_s9, %s704_s9  }
   0x8   : > { %s559_s15 = sadd.s32 1, %s517_s12   ;;  %s28_s16 = sadd.s32 1, %s513_s11 }
   0x9   : > { %s25_s17 = ssub.s32 %s517_s12, %s559_s15  ;;  %p35_p0 = scmp.ne.s32.totalorder %s513_s11, %s509_s10 }
   0xa   : > { %p26_p1 = scmp.eq.s32.totalorder %s25_s17, 0  ;;  %p36_p2 = scmp.eq.s32.totalorder %s517_s12, 0 }
   0xb   : > { %p41_p3 = scmp.ne.s32.totalorder %s509_s10, %s505_s9  ;;  %p42_p4 = scmp.eq.s32.totalorder %s555_s13, 0 }
   0xc   : > { %s571_s18 = scalar_select %p26_p1, %s513_s11, %s28_s16  }
   0xd   : > { %p573_p5 = por %p36_p2, %p35_p0  ;;  %p577_p6 = por %p42_p4, %p41_p3 }
   0xe   : > { %p91_p7 = scmp.eq.s32.totalorder %s555_s13, 1  ;;  %p97_p8 = scmp.eq.s32.totalorder %s319_s14, 1 }
   0xf   : > { %p351_p10 = scmp.lt.s32.totalorder %s517_s12, 2  ;;  %s593_s23 = sand.u32 1, %s513_s11  }
  0x10   : > { %p584_p11 = por %p91_p7, %p35_p0  ;;  %p588_p12 = por %p97_p8, %p41_p3 }
  0x11   : > { %s323_s24 = sshll.u32 %s517_s12, 3  ;;  %s322_s25 = sshll.u32 %s593_s23, 3 }
  0x12   : > { %s125_s28 = scalar_lea.hbm %s694_s0, %s323_s24  ;;  %s121_s30 = scalar_lea.vmem [#allocation2], %s322_s25 }
  0x13   : > { %s127_s29 = sshll.u32 %s125_s28, 4  ;;  %s129_s3 = sshll.u32 %s121_s30, 4  ;;  %s128_s29 = int_to_ptr.hbm [resolvable:$true] %s127_s29  ;;  %s130_s3 = int_to_ptr.vmem [resolvable:$true] %s129_s3 }
  0x14   : > { %p602_p13 = pnand %p351_p10, %p573_p5  ;;  %p326_p0 = scmp.ge.s32.totalorder %s517_s12, 1 }
  0x15   : > { %p153_p1 = scmp.lt.s32.totalorder %s517_s12, 3  ;;  %s118_s5 = scalar_lea.sflag [#allocation3], %s593_s23 }
  0x16   : > { %s387_s6 = sshra.s32 %s128_s29, 4  ;;  %p391_p3 = pneg %p602_p13  ;;  %s388_s6 = int_to_ptr.hbm [resolvable:$true] %s387_s6 }
  0x17   : > { %s389_s7 = scalar_lea.hbm %s388_s6, 8  ;;  %s394_s16 = scalar_lea.hbm %s694_s0, 16 }
  0x18   : > { %p390_p2 = scmp.ne.s32.totalorder %s388_s6, %s389_s7  ;;  %p395_p5 = scmp.lt.s32.totalorder %s388_s6, %s694_s0 }
  0x19   : > { %p396_p8 = scmp.lt.s32.totalorder %s394_s16, %s389_s7 }
  0x1a   : > { %p392_p4 = pnand %p391_p3, %p390_p2 }
  0x1b   : > { %p397_p10 = por %p396_p8, %p395_p5 }
  0x1c   : > { %p393_p7 = pneg %p392_p4 }
  0x1e   : > { %p398_p9 = pnand %p397_p10, %p393_p7 }
  0x20   : > { %401 = shalt.err (!%p398_p9)
}
  0x21   : > { %343 = dma.hbm_to_vmem [thread:$0]  (!%p602_p13), %s128_s29, 128, %s130_s3, %s118_s5  }
  0x22   : > { %p626_p2 = pnand %p326_p0, %p153_p1  ;;  %s144_s30 = scalar_lea.hbm %s695_s1, %s323_s24 }
  0x23   : > { %s146_s6 = sshll.u32 %s144_s30, 4  ;;  %s140_s7 = scalar_lea.vmem [#allocation5], %s322_s25  ;;  %s147_s6 = int_to_ptr.hbm [resolvable:$true] %s146_s6 }
  0x24   : > { %s148_s8 = sshll.u32 %s140_s7, 4  ;;  %s137_s14 = scalar_lea.sflag [#allocation6], %s593_s23  ;;  %s149_s8 = int_to_ptr.vmem [resolvable:$true] %s148_s8 }
  0x25   : > { %s417_s16 = sshra.s32 %s147_s6, 4  ;;  %s424_s5 = scalar_lea.hbm %s695_s1, 16  ;;  %s418_s16 = int_to_ptr.hbm [resolvable:$true] %s417_s16 }
  0x26   : > { %s419_s17 = scalar_lea.hbm %s418_s16, 8  ;;  %p425_p4 = scmp.lt.s32.totalorder %s418_s16, %s695_s1 }
  0x27   : > { %p420_p9 = scmp.ne.s32.totalorder %s418_s16, %s419_s17  ;;  %p426_p7 = scmp.lt.s32.totalorder %s424_s5, %s419_s17 }
  0x29   : > { %p422_p0 = pnand %p420_p9, %p391_p3  ;;  %p427_p5 = por %p426_p7, %p425_p4 }
  0x2b   : > { %p423_p1 = pneg %p422_p0 }
  0x2d   : > { %p428_p8 = pnand %p427_p5, %p423_p1 }
  0x2f   : > { %431 = shalt.err (!%p428_p8)
}
  0x30   : > { %346 = dma.hbm_to_vmem [thread:$0]  (!%p602_p13), %s147_s6, 128, %s149_s8, %s137_s14  }
  0x31   : > { %157 = sbr.rel (%p626_p2) target bundleno = 72 (0x48), region = 28  ;;  %s648_s23 = sand.u32 (!%p626_p2), 1, %s509_s10  }
  0x32   : > { %s327_s25 = sshll.u32 (!%p626_p2), %s648_s23, 3  ;;  %s160_s27 = scalar_lea.sflag (!%p626_p2), [#allocation3], %s648_s23 }
  0x33   : > { %s163_s28 = scalar_lea.vmem (!%p626_p2), [#allocation2], %s327_s25 }
  0x36   : > { %492 = dma.done.wait (%p577_p6), %s160_s27, 128  }
  0x37   : > { %494 = vsyncadd (%p577_p6), %s160_s27, 4294967168  ;;  %s170_s4 = scalar_lea.sflag [#allocation6], %s648_s23  ;;  %s173_s30 = scalar_lea.vmem [#allocation5], %s327_s25 }
  0x38   : > { %496 = dma.done.wait (%p577_p6), %s170_s4, 128  }
  0x39   : > { %498 = vsyncadd (%p577_p6), %s170_s4, 4294967168  ;;  %v200_v0 = vld [vmem:[%s163_s28] sm:$0xff]  ;;  %v201_v1 = vld [vmem:[%s173_s30] sm:$0xff]  ;;  %s331_s26 = sshll.u32 %s555_s13, 3  ;;  %s199_s14 = scalar_lea.vmem [#allocation7], %s327_s25 }
  0x3a   : > { %v205_v2 = vmul.f32 1.442695, %v201_v1  ;;  %v202_v3 = vadd.f32 1.0, %v201_v1  ;;  %v203_v4 = vmul.f32 %v200_v0, %v200_v0  ;;  %s221_s8 = scalar_lea.hbm %s696_s2, %s331_s26  ;;  %s223_s16 = sshll.u32 %s199_s14, 4  ;;  %s224_s16 = int_to_ptr.vmem [resolvable:$true] %s223_s16 }
  0x3b   : > { %s225_s17 = sshll.u32 %s221_s8, 4  ;;  %s211_s20 = scalar_lea.sflag [#allocation4], %s648_s23  ;;  %s226_s17 = int_to_ptr.hbm [resolvable:$true] %s225_s17 }
  0x3c   : > { %385 = vpow2.f32 %v205_v2  ;;  %v204_v5 = vsub.f32 %v202_v3, %v203_v4  ;;  %s461_s29 = sshra.s32 %s226_s17, 4  ;;  %s467_s19 = scalar_lea.hbm %s696_s2, 16  ;;  %s462_s29 = int_to_ptr.hbm [resolvable:$true] %s461_s29 }
  0x3d   : > { %s463_s13 = scalar_lea.hbm %s462_s29, 8  ;;  %p468_p10 = scmp.lt.s32.totalorder %s462_s29, %s696_s2 }
  0x3e   : > { %p464_p6 = scmp.ne.s32.totalorder %s462_s29, %s463_s13  ;;  %p469_p2 = scmp.lt.s32.totalorder %s467_s19, %s463_s13 }
  0x40   : > { %p465_p13 = pnand %p464_p6, %p584_p11  ;;  %p470_p9 = por %p469_p2, %p468_p10 }
  0x42   : > { %v386_v6 = vpop.eup %385  ;;  %p466_p3 = pneg %p465_p13 }
  0x43   : > { %v207_v7 = vsub.f32 %v204_v5, %v386_v6 }
  0x44   : > { %p471_p0 = pnand %p470_p9, %p466_p3 }
  0x45   : > { %209 = vst [vmem:[%s199_s14] sm:$0xff] %v207_v7 }
  0x46   : > { %474 = shalt.err (!%p471_p0)
}
  0x47   : > { %338 = dma.vmem_to_hbm [thread:$0]  (%p584_p11), %s224_s16, 128, %s226_s17, %s211_s20  }
  0x48 PF: > { %s237_s23 = sand.u32 1, %s505_s9   ;;  %p703_p1 = scmp.ge.s32.totalorder %s517_s12, 2 }
  0x49   : > { %s238_s27 = scalar_lea.sflag [#allocation4], %s237_s23 }
  0x4a   : > { %p348_p4 = pnand %p703_p1, %p588_p12 }
  0x4c   : > { %p349_p7 = pneg %p348_p4 }
  0x4e   : > { %500 = dma.done.wait (%p349_p7), %s238_s27, 128  }
  0x4f   : > { %502 = vsyncadd (%p349_p7), %s238_s27, 4294967168  ;;  %p18_p5 = scmp.ge.s32.totalorder %s559_s15, 4   ;;  %s704_s9 = smov %s509_s10 }
  0x50   : > { %s705_s10 = smov %s513_s11  ;;  %s706_s11 = smov %s571_s18 }
  0x51   : > { %s707_s12 = smov %s559_s15  ;;  %20 = sbr.rel (!%p18_p5) target bundleno = 7 (0x7), region = 86 }
  0x56   :  { %244 = vsyncpa [#allocation3], 1 }
  0x57   :  { %246 = vsyncpa [#allocation3 + $0x1], 1 }
  0x58   :  { %247 = vsyncpa [#allocation6], 1 }
  0x59   :  { %249 = vsyncpa [#allocation6 + $0x1], 1 }
  0x5a   :  { %250 = vsyncpa [#allocation4], 1 }
  0x5b   :  { %252 = vsyncpa [#allocation4 + $0x1], 1 }

</bundles_post_ra>
